<compile_context>
chip_gen: v7x
topology: tpu7x:2x2x1
jax: 0.10.0
libtpu: 0.0.40
codegen_flags: <defaults>
</compile_context>

<pallas_src>
import jax
import jax.numpy as jnp
from jax.experimental import pallas as pl
from jax.experimental.pallas import tpu as pltpu

_G = 8  # original rows packed per lane-row (lane width = _G * hidden = 256)


def _mlp_disc_kernel(hg_ref, wg_ref, b_ref, o_ref):
    # hg_ref: (tile_a, G*H) VMEM  -- G packed rows of h per sublane-row (lane-dense)
    # wg_ref: (G*H, G)      VMEM  -- block-diagonal weight, resident (constant index_map)
    # b_ref : (1,)          SMEM  -- scalar bias
    # o_ref : (tile_a, G)   VMEM  -- G logits per sublane-row
    x = hg_ref[...].astype(jnp.float32)                     # no-op for f32 inputs
    logits = jnp.dot(x, wg_ref[...], preferred_element_type=jnp.float32)
    logits = logits + b_ref[0]
    o_ref[...] = jax.nn.sigmoid(logits).astype(o_ref.dtype)


def _round_up(x, m):
    return ((x + m - 1) // m) * m


def _choose_tile_a(a_total, bytes_per_lane_row):
    """Pick the block size along the grouped-row axis.

    Targets ~4 MiB input blocks, but prefers >=4 (then >=2) grid blocks so
    v7x's two TensorCores both get work, with a floor (~256 grouped rows =
    2048 original rows) so per-step grid overhead stays amortized.
    """
    max_tile = max(16, ((4 * 1024 * 1024) // bytes_per_lane_row) // 16 * 16)
    min_tile = 256
    if a_total <= min_tile:
        return a_total                         # single (possibly small) block
    for nblk in (4, 2):
        cand = _round_up(pl.cdiv(a_total, nblk), 16)
        if min_tile <= cand <= max_tile:
            return cand
    return min(max_tile, a_total)


def mlp_discriminator_forward(h, weight, bias, *, group=_G):
    """sigmoid(h @ weight.T + bias).  h: (N, H); weight: (1, H); bias: (1,) -> (N, 1)."""
    N, H = h.shape
    g = group

    # Pad rows only to a multiple of the small group size g (copies h only when
    # N % g != 0 -- never pads to a tile multiple).
    n_al = pl.cdiv(N, g) * g
    h_p = h if n_al == N else jnp.pad(h, ((0, n_al - N), (0, 0)))
    a_total = n_al // g

    # FREE metadata reshape (row-major contiguous): g rows per lane-row.
    hg = h_p.reshape(a_total, g * H)

    # Tiny block-diagonal weight so the contraction lands lane-grouped:
    #   w_big[l*H + k, l'] = w[k] * (l == l')      shape (g*H, g)  (~8 KiB f32)
    w_vec = weight.reshape(H).astype(jnp.float32)
    w_big = (jnp.eye(g, dtype=jnp.float32)[:, None, :]
             * w_vec[None, :, None]).reshape(g * H, g)
    b1d = bias.reshape(1).astype(jnp.float32)

    tile_a = _choose_tile_a(a_total, g * H * h.dtype.itemsize)
    grid = (pl.cdiv(a_total, tile_a),)

    out = pl.pallas_call(
        _mlp_disc_kernel,
        out_shape=jax.ShapeDtypeStruct((a_total, g), h.dtype),
        grid_spec=pltpu.PrefetchScalarGridSpec(
            num_scalar_prefetch=0,
            grid=grid,
            in_specs=[
                # Node features: lane-dense (g*H = 256 lanes), pipelined over rows.
                pl.BlockSpec((tile_a, g * H), lambda i: (i, 0)),
                # Block-diagonal weight: constant block index -> stays VMEM-resident.
                pl.BlockSpec((g * H, g), lambda i: (0, 0)),
                # Scalar bias in SMEM (not a padded VMEM tile).
                pl.BlockSpec(memory_space=pltpu.MemorySpace.SMEM),
            ],
            out_specs=pl.BlockSpec((tile_a, g), lambda i: (i, 0)),
        ),
        compiler_params=pltpu.CompilerParams(
            # Embarrassingly parallel over node groups: shards across both TCs
            # on v7x (>=2 blocks guaranteed for mid/large N), no-op on v5e/v6e.
            dimension_semantics=("parallel",),
        ),
        cost_estimate=pl.CostEstimate(
            flops=2 * N * H,
            transcendentals=N,
            bytes_accessed=h.dtype.itemsize * (N * H + N),
        ),
    )(hg, w_big, b1d)

    # (a_total, g) flattens back to the original row order; drop the row pad.
    return out.reshape(n_al, 1)[:N]


if __name__ == "__main__":
    hidden = 32

    key = jax.random.PRNGKey(0)
    k1, k2, k3, kw, kb = jax.random.split(key, 5)

    # torch.nn.Linear-style init: U(-1/sqrt(in), 1/sqrt(in)) for weight and bias.
    bound = 1.0 / (hidden ** 0.5)
    weight = jax.random.uniform(kw, (1, hidden), jnp.float32, -bound, bound)
    bias = jax.random.uniform(kb, (1,), jnp.float32, -bound, bound)

    fwd = jax.jit(mlp_discriminator_forward)

    def ref(h):
        return jax.nn.sigmoid(h @ weight.T + bias[None, :])

    # N=8    : g-aligned, zero-copy path, single tiny block.
    # N=300  : N % g != 0 -> row-pad path + output slicing.
    # N=4104 : multi-block grid (2 blocks, "parallel") with a partial edge block.
    # Tolerance covers MXU f32 pass decomposition; typical error is ~1e-6.
    for n, kk in ((8, k1), (300, k2), (4104, k3)):
        h = jax.random.normal(kk, (n, hidden), jnp.float32)
        out = jax.block_until_ready(fwd(h, weight, bias))
        assert out.shape == (n, 1), out.shape
        assert jnp.allclose(out, ref(h), atol=3e-3), f"mismatch at N={n}"

    print("KERNEL_OK")
</pallas_src>

<mosaic_0001>
module attributes {stable_mosaic.version = 11 : i64} {
  func.func @_mlp_disc_kernel(%arg0: i32, %arg1: memref<1x256xf32, #tpu.memory_space<vmem>>, %arg2: memref<256x8xf32, #tpu.memory_space<vmem>>, %arg3: memref<1xf32, #tpu.memory_space<smem>>, %arg4: memref<1x8xf32, #tpu.memory_space<vmem>>) attributes {dimension_semantics = [#tpu.dimension_semantics<parallel>], iteration_bounds = array<i64: 1>, scalar_prefetch = 0 : i64, scratch_operands = 0 : i64, tpu.core_type = #tpu.core_type<tc>, window_params = [{transform_indices = @transform_0, window_bounds = array<i64: 1, 256>}, {pipeline_mode = #tpu.pipeline_mode<synchronous>, transform_indices = @transform_1, window_bounds = array<i64: 256, 8>}, {transform_indices = @transform_2, window_bounds = array<i64: 1>}, {transform_indices = @transform_3, window_bounds = array<i64: 1, 8>}]} {
    %c0 = arith.constant 0 : index
    %c0_0 = arith.constant 0 : index
    %0 = vector.load %arg1[%c0, %c0_0] : memref<1x256xf32, #tpu.memory_space<vmem>>, vector<1x256xf32>
    %c0_1 = arith.constant 0 : index
    %c0_2 = arith.constant 0 : index
    %1 = vector.load %arg2[%c0_1, %c0_2] : memref<256x8xf32, #tpu.memory_space<vmem>>, vector<256x8xf32>
    %cst = arith.constant dense<0.000000e+00> : vector<1x8xf32>
    %2 = tpu.matmul %0, %1, %cst {dimension_numbers = #tpu.dot_dimension_numbers<[1], [0], [0], [1], [0, 0, 1, 1], [], []>} : vector<1x256xf32>, vector<256x8xf32>, vector<1x8xf32> -> vector<1x8xf32>
    %c0_3 = arith.constant 0 : index
    %3 = memref.load %arg3[%c0_3] : memref<1xf32, #tpu.memory_space<smem>>
    %4 = vector.broadcast %3 : f32 to vector<1x8xf32>
    %5 = arith.addf %2, %4 : vector<1x8xf32>
    %6 = arith.negf %5 : vector<1x8xf32>
    %7 = math.exp %6 : vector<1x8xf32>
    %cst_4 = arith.constant 1.000000e+00 : f32
    %8 = vector.broadcast %cst_4 : f32 to vector<1x8xf32>
    %9 = arith.addf %8, %7 : vector<1x8xf32>
    %10 = arith.divf %8, %9 : vector<1x8xf32>
    %c0_5 = arith.constant 0 : index
    %c0_6 = arith.constant 0 : index
    %11 = vector.load %arg4[%c0_5, %c0_6] : memref<1x8xf32, #tpu.memory_space<vmem>>, vector<1x8xf32>
    tpu.vector_store %arg4[%c0_5, %c0_6], %10 {strides = array<i32>} : memref<1x8xf32, #tpu.memory_space<vmem>>, vector<1x8xf32>,
    return
  }
  func.func @transform_0(%arg0: i32) -> (i32, i32) {
    %c0_i32 = arith.constant 0 : i32
    %c0_i32_0 = arith.constant 0 : i32
    return %arg0, %c0_i32 : i32, i32
  }
  func.func @transform_1(%arg0: i32) -> (i32, i32) {
    %c0_i32 = arith.constant 0 : i32
    %c0_i32_0 = arith.constant 0 : i32
    %c0_i32_1 = arith.constant 0 : i32
    return %c0_i32, %c0_i32_0 : i32, i32
  }
  func.func @transform_2(%arg0: i32) -> i32 {
    %c0_i32 = arith.constant 0 : i32
    %c0_i32_0 = arith.constant 0 : i32
    return %c0_i32 : i32
  }
  func.func @transform_3(%arg0: i32) -> (i32, i32) {
    %c0_i32 = arith.constant 0 : i32
    %c0_i32_0 = arith.constant 0 : i32
    return %arg0, %c0_i32 : i32, i32
  }
}

</mosaic_0001>

<bundles_post_ra>
// kernel: mlp_discriminator_forward.1
= control target key start
LH: loop header
LB: loop body
LE: loop exit
PB: predicated region body
PF: predicated region fallthrough
CT: control target
= control target key end

     0   :  { %v52_v3 = vlaneseq  ;;  %s386_s0 = inlined_call_operand.vmem [shape: f32[1,256], index: 0, kind: input, shape index: {}]   ;;  %s387_s1 = inlined_call_operand.vmem [shape: f32[256,8], index: 1, kind: input, shape index: {}]   ;;  %s388_s2 = inlined_call_operand.<no memory space> [shape: f32[1], index: 2, kind: input, shape index: {}]   ;;  %s389_s3 = inlined_call_operand.hbm [shape: f32[1,8], index: 3, kind: output, shape index: {}]  }
   0x1   :  { %v33_v0 = vld [vmem:[%s387_s1 + $0x80] sm:$0xff]  ;;  %v34_v1 = vld [vmem:[%s387_s1 + $0x88] sm:$0xff]  ;;  %v35_v6 = vld [vmem:[%s387_s1 + $0x90] sm:$0xff] }
   0x2   :  { %v17_v2 = vld [vmem:[%s387_s1] sm:$0xff]  ;;  %v190_v4 = vpack.c.bf16 %v34_v1, %v33_v0  ;;  %v18_v5 = vld [vmem:[%s387_s1 + $0x8] sm:$0xff]  ;;  %v36_v7 = vld [vmem:[%s387_s1 + $0x98] sm:$0xff]  ;;  %v53_v14 = vshrl.u32 %v52_v3, 7 }
   0x3   :  { %v192_v8 = vpack.c.bf16 %v18_v5, %v17_v2  ;;  %v194_v9 = vpack.c.bf16 %v36_v7, %v35_v6  ;;  %v19_v10 = vld [vmem:[%s387_s1 + $0x10] sm:$0xff]  ;;  %v20_v11 = vld [vmem:[%s387_s1 + $0x18] sm:$0xff]  ;;  %v37_v12 = vld [vmem:[%s387_s1 + $0xa0] sm:$0xff] }
   0x4   :  { %191 = vmatprep.subr.bf16.mxu0 %v190_v4  ;;  %v38_v13 = vld [vmem:[%s387_s1 + $0xa8] sm:$0xff]  ;;  %v196_v15 = vpack.c.bf16 %v20_v11, %v19_v10  ;;  %v21_v17 = vld [vmem:[%s387_s1 + $0x20] sm:$0xff]  ;;  %v39_v19 = vld [vmem:[%s387_s1 + $0xb0] sm:$0xff]  ;;  %v58_v21 = vsub.s32 1, %v53_v14 }
   0x5   :  { %193 = vmatpush3.bf16.msra.mxu0 %v192_v8  ;;  %v198_v16 = vpack.c.bf16 %v38_v13, %v37_v12  ;;  %v22_v18 = vld [vmem:[%s387_s1 + $0x28] sm:$0xff]  ;;  %v40_v20 = vld [vmem:[%s387_s1 + $0xb8] sm:$0xff]  ;;  %v23_v24 = vld [vmem:[%s387_s1 + $0x30] sm:$0xff] }
   0x6   :  { %195 = vmatprep.subr.bf16.mxu0 %v194_v9  ;;  %v200_v22 = vpack.c.bf16 %v22_v18, %v21_v17  ;;  %v202_v23 = vpack.c.bf16 %v40_v20, %v39_v19  ;;  %v24_v25 = vld [vmem:[%s387_s1 + $0x38] sm:$0xff]  ;;  %v41_v26 = vld [vmem:[%s387_s1 + $0xc0] sm:$0xff]  ;;  %v42_v27 = vld [vmem:[%s387_s1 + $0xc8] sm:$0xff] }
   0x7   :  { %v16_v28 = vld [vmem:[%s386_s0] sm:$0x3] }
   0x8   :  { %v59_v29 = vrot.slane %v16_v28, %v58_v21 }
   0x9   :  { %197 = vmatpush3.bf16.msra.mxu0 %v196_v15 }
   0xa   :  { %199 = vmatprep.subr.bf16.mxu0 %v198_v16 }
   0xb   :  { %9 = vsyncpa [#allocation4], 0  ;;  %v204_v30 = vpack.c.bf16 %v24_v25, %v23_v24  ;;  %v206_v31 = vpack.c.bf16 %v42_v27, %v41_v26  ;;  %v25_v32 = vld [vmem:[%s387_s1 + $0x40] sm:$0xff]  ;;  %v26_v33 = vld [vmem:[%s387_s1 + $0x48] sm:$0xff]  ;;  %126 = vmatprep.mubr.f32.mxu0 %v59_v29  ;;  %v54_v52 = vsub.s32 0, %v53_v14  ;;  %v50_v56 = vstv %s388_s2 }
   0xc   :  { %v43_v34 = vld [vmem:[%s387_s1 + $0xd0] sm:$0xff]  ;;  %v44_v35 = vld [vmem:[%s387_s1 + $0xd8] sm:$0xff]  ;;  %v208_v36 = vpack.c.bf16 %v26_v33, %v25_v32  ;;  %v45_v40 = vld [vmem:[%s387_s1 + $0xe0] sm:$0xff]  ;;  %vm138_vm0 = vcmask 57344  }
   0xd   :  { %201 = vmatpush3.bf16.msra.mxu0 %v200_v22  ;;  %v210_v37 = vpack.c.bf16 %v44_v35, %v43_v34  ;;  %v27_v38 = vld [vmem:[%s387_s1 + $0x50] sm:$0xff]  ;;  %v28_v39 = vld [vmem:[%s387_s1 + $0x58] sm:$0xff]  ;;  %v46_v41 = vld [vmem:[%s387_s1 + $0xe8] sm:$0xff]  ;;  %v55_v54 = vrot.slane %v16_v28, %v54_v52 }
   0xe   :  { %203 = vmatprep.subr.bf16.mxu0 %v202_v23  ;;  %v212_v42 = vpack.c.bf16 %v28_v39, %v27_v38  ;;  %v214_v43 = vpack.c.bf16 %v46_v41, %v45_v40  ;;  %v29_v44 = vld [vmem:[%s387_s1 + $0x60] sm:$0xff]  ;;  %v30_v45 = vld [vmem:[%s387_s1 + $0x68] sm:$0xff]  ;;  %v47_v46 = vld [vmem:[%s387_s1 + $0xf0] sm:$0xff] }
   0xf   :  { %v48_v47 = vld [vmem:[%s387_s1 + $0xf8] sm:$0xff]  ;;  %v216_v48 = vpack.c.bf16 %v30_v45, %v29_v44  ;;  %v31_v50 = vld [vmem:[%s387_s1 + $0x70] sm:$0xff] }
  0x10   :  { %v218_v49 = vpack.c.bf16 %v48_v47, %v47_v46  ;;  %v32_v51 = vld [vmem:[%s387_s1 + $0x78] sm:$0xff]  ;;  %s251_s1 = smov [#allocation3]  }
  0x11   :  { %205 = vmatpush3.bf16.msra.mxu0 %v204_v30  ;;  %v220_v53 = vpack.c.bf16 %v32_v51, %v31_v50  ;;  %s146_s25 = sshll.u32 %s251_s1, 4  ;;  %s147_s25 = int_to_ptr.vmem [resolvable:$true] %s146_s25 }
  0x12   :  { %207 = vmatprep.subr.bf16.mxu0 %v206_v31  ;;  %s227_s26 = scalar_lea.vmem %s147_s25, 16  ;;  %s231_s27 = scalar_lea.vmem %s147_s25, 32 }
  0x13   :  { %p228_p0 = scmp.ne.s32.totalorder %s147_s25, %s227_s26  ;;  %p232_p1 = scmp.lt.s32.totalorder %s147_s25, %s147_s25 }
  0x14   :  { %p233_p2 = scmp.lt.s32.totalorder %s231_s27, %s227_s26 }
  0x15   :  { %209 = vmatpush3.bf16.msra.mxu0 %v208_v36 }
  0x16   :  { %211 = vmatprep.subr.bf16.mxu0 %v210_v37  ;;  %p234_p3 = por %p233_p2, %p232_p1 }
  0x18   :  { %p235_p4 = pnand %p234_p3, %p228_p0 }
  0x19   :  { %213 = vmatpush3.bf16.msra.mxu0 %v212_v42 }
  0x1a   :  { %215 = vmatprep.subr.bf16.mxu0 %v214_v43 }
  0x1d   :  { %217 = vmatpush3.bf16.msra.mxu0 %v216_v48 }
  0x1e   :  { %219 = vmatprep.subr.bf16.mxu0 %v218_v49 }
  0x21   :  { %221 = vmatpush3.bf16.msra.mxu0 %v220_v53 }
  0x24   :  { %127 = vmatmul.mubr.f32.vlgmr.msra.gmra.mrb[0].mxu0 %v55_v54 }
  0xf7   :  { %v187_v55 = vpop.f32.mrb[0].mxu0 }
  0xf8   :  { %v188_v57 = vpop.f32.mrb[1].mxu0 }
  0xf9   :  { %v189_v58 = vadd.f32 %v188_v57, %v187_v55 }
  0xfb   :  { %v129_v59 = vadd.f32 %v189_v58, %v50_v56 }
  0xfd   :  { %v154_v60 = vmul.f32 -1.442695, %v129_v59 }
  0xff   :  { %223 = vpow2.f32 %v154_v60 }
 0x109   :  { %v224_v61 = vpop.eup %223 }
 0x10a   :  { %v135_v62 = vadd.f32 1.0, %v224_v61 }
 0x10c   :  { %225 = vrcp.f32 %v135_v62 }
 0x116   :  { %v226_v63 = vpop.eup %225 }
 0x117   :  { %139 = vst.msk [vmem:[#allocation3] sm:$0x1] %vm138_vm0, %v226_v63 }
 0x118   :  { %238 = shalt.err (!%p235_p4)
}
 0x119   :  { %s239_s0 = scalar_lea.hbm %s389_s3, 16 }
 0x11a   :  { %p240_p5 = scmp.ne.s32.totalorder %s389_s3, %s239_s0  ;;  %p243_p6 = scmp.lt.u32.totalorder %s239_s0, %s389_s3 }
 0x11c   :  { %p245_p7 = pnand %p243_p6, %p240_p5 }
 0x11e   :  { %248 = shalt.err (!%p245_p7)
}
 0x11f   :  { %149 = dma.vmem_to_hbm [thread:$0]  %s147_s25, 16, %s389_s3, [#allocation4]  }
 0x120   :  { %249 = dma.done.wait [#allocation4], 16  }
 0x121   :  { %250 = vsyncadd [#allocation4], 4294967280 }
 0x122   :  { %153 = vsyncpa [#allocation4], 1 }

</bundles_post_ra>
